<compile_context>
chip_gen: v7x
topology: tpu7x:2x2x1
jax: 0.10.0
libtpu: 0.0.40
codegen_flags: <defaults>
</compile_context>

<pallas_src>
import functools

import jax
import jax.numpy as jnp
from jax.experimental import pallas as pl
from jax.experimental.pallas import tpu as pltpu

_LANES = 128
_SUBLANES = 8


def logreg_kernel(x_ref, w_ref, b_ref, o_ref):
    # Linear(1,1) + sigmoid on a lane-dense (tile_rows, 128) slab.
    x = x_ref[...]                 # (tile_rows, 128) f32
    w = w_ref[0]                   # scalar weight from SMEM
    b = b_ref[0]                   # scalar bias from SMEM
    z = x * w + b                  # VPU mul-add, scalar broadcast
    o_ref[...] = jax.nn.sigmoid(z)  # EUP exp + VPU recip path


@functools.partial(jax.jit, static_argnames=("tile_rows",))
def logistic_regression_forward(x, w, b, *, tile_rows=512):
    """x: (N, 1) f32, w: (1, 1) f32, b: (1, 1) f32 -> (N, 1) f32."""
    N = x.shape[0]
    x_flat = x.reshape(-1).astype(jnp.float32)

    # Lane-dense slab: pad N so it maps onto (rows, 128) with rows a multiple
    # of 8 sublanes, then (if large) a multiple of the row tile.
    rows = pl.cdiv(N, _LANES)
    rows = ((rows + _SUBLANES - 1) // _SUBLANES) * _SUBLANES
    tile_r = min(tile_rows, rows)
    rows = ((rows + tile_r - 1) // tile_r) * tile_r
    n_pad = rows * _LANES

    x_slab = jnp.pad(x_flat, (0, n_pad - N)).reshape(rows, _LANES)
    grid = (rows // tile_r,)

    out_slab = pl.pallas_call(
        logreg_kernel,
        out_shape=jax.ShapeDtypeStruct((rows, _LANES), jnp.float32),
        grid=grid,
        in_specs=[
            pl.BlockSpec((tile_r, _LANES), lambda i: (i, 0)),  # lane-dense input tile
            pl.BlockSpec(memory_space=pltpu.SMEM),             # (1,) weight scalar
            pl.BlockSpec(memory_space=pltpu.SMEM),             # (1,) bias scalar
        ],
        out_specs=pl.BlockSpec((tile_r, _LANES), lambda i: (i, 0)),
        compiler_params=pltpu.CompilerParams(
            dimension_semantics=("parallel",),
        ),
    )(x_slab, w.reshape(1).astype(jnp.float32), b.reshape(1).astype(jnp.float32))

    return out_slab.reshape(-1)[:N].reshape(N, 1)


if __name__ == "__main__":
    key = jax.random.PRNGKey(0)
    kx, kw, kb = jax.random.split(key, 3)

    # Input analogous to np.linspace(0, 10, 200) reshaped to (200, 1)
    N = 200
    x = jnp.linspace(0.0, 10.0, N, dtype=jnp.float32).reshape(N, 1)

    # Deterministic parameter init, mimicking nn.Linear(1,1) U(-1, 1)
    w = jax.random.uniform(kw, (1, 1), jnp.float32, minval=-1.0, maxval=1.0)
    b = jax.random.uniform(kb, (1, 1), jnp.float32, minval=-1.0, maxval=1.0)

    y = logistic_regression_forward(x, w, b)
    jax.block_until_ready(y)

    # Reference check in plain JAX
    y_ref = jax.nn.sigmoid(x * w[0, 0] + b[0, 0])
    assert y.shape == (N, 1), f"bad shape {y.shape}"
    assert jnp.allclose(y, y_ref, atol=1e-6), "mismatch vs reference"

    print("KERNEL_OK")
</pallas_src>

<mosaic_0001>
module attributes {stable_mosaic.version = 11 : i64} {
  func.func @logreg_kernel(%arg0: i32, %arg1: memref<8x128xf32, #tpu.memory_space<vmem>>, %arg2: memref<1xf32, #tpu.memory_space<smem>>, %arg3: memref<1xf32, #tpu.memory_space<smem>>, %arg4: memref<8x128xf32, #tpu.memory_space<vmem>>) attributes {dimension_semantics = [#tpu.dimension_semantics<parallel>], iteration_bounds = array<i64: 1>, scalar_prefetch = 0 : i64, scratch_operands = 0 : i64, tpu.core_type = #tpu.core_type<tc>, window_params = [{transform_indices = @transform_0, window_bounds = array<i64: 8, 128>}, {transform_indices = @transform_1, window_bounds = array<i64: 1>}, {transform_indices = @transform_2, window_bounds = array<i64: 1>}, {transform_indices = @transform_3, window_bounds = array<i64: 8, 128>}]} {
    %c0 = arith.constant 0 : index
    %c0_0 = arith.constant 0 : index
    %0 = vector.load %arg1[%c0, %c0_0] : memref<8x128xf32, #tpu.memory_space<vmem>>, vector<8x128xf32>
    %c0_1 = arith.constant 0 : index
    %1 = memref.load %arg2[%c0_1] : memref<1xf32, #tpu.memory_space<smem>>
    %c0_2 = arith.constant 0 : index
    %2 = memref.load %arg3[%c0_2] : memref<1xf32, #tpu.memory_space<smem>>
    %3 = vector.broadcast %1 : f32 to vector<8x128xf32>
    %4 = arith.mulf %0, %3 : vector<8x128xf32>
    %5 = vector.broadcast %2 : f32 to vector<8x128xf32>
    %6 = arith.addf %4, %5 : vector<8x128xf32>
    %7 = arith.negf %6 : vector<8x128xf32>
    %8 = math.exp %7 : vector<8x128xf32>
    %cst = arith.constant 1.000000e+00 : f32
    %9 = vector.broadcast %cst : f32 to vector<8x128xf32>
    %10 = arith.addf %9, %8 : vector<8x128xf32>
    %11 = arith.divf %9, %10 : vector<8x128xf32>
    %c0_3 = arith.constant 0 : index
    %c0_4 = arith.constant 0 : index
    %12 = vector.load %arg4[%c0_3, %c0_4] : memref<8x128xf32, #tpu.memory_space<vmem>>, vector<8x128xf32>
    tpu.vector_store %arg4[%c0_3, %c0_4], %11 {strides = array<i32>} : memref<8x128xf32, #tpu.memory_space<vmem>>, vector<8x128xf32>,
    return
  }
  func.func @transform_0(%arg0: i32) -> (i32, i32) {
    %c0_i32 = arith.constant 0 : i32
    %c0_i32_0 = arith.constant 0 : i32
    return %arg0, %c0_i32 : i32, i32
  }
  func.func @transform_1(%arg0: i32) -> i32 {
    %c0_i32 = arith.constant 0 : i32
    %c0_i32_0 = arith.constant 0 : i32
    return %c0_i32 : i32
  }
  func.func @transform_2(%arg0: i32) -> i32 {
    %c0_i32 = arith.constant 0 : i32
    %c0_i32_0 = arith.constant 0 : i32
    return %c0_i32 : i32
  }
  func.func @transform_3(%arg0: i32) -> (i32, i32) {
    %c0_i32 = arith.constant 0 : i32
    %c0_i32_0 = arith.constant 0 : i32
    return %arg0, %c0_i32 : i32, i32
  }
}

</mosaic_0001>

<bundles_post_ra>
// kernel: logistic_regression_forward.1
= control target key start
LH: loop header
LB: loop body
LE: loop exit
PB: predicated region body
PF: predicated region fallthrough
CT: control target
= control target key end

     0   :  { %s71_s0 = inlined_call_operand.vmem [shape: f32[8,128], index: 0, kind: input, shape index: {}]   ;;  %s72_s1 = inlined_call_operand.<no memory space> [shape: f32[1], index: 1, kind: input, shape index: {}]   ;;  %s73_s2 = inlined_call_operand.<no memory space> [shape: f32[1], index: 2, kind: input, shape index: {}]   ;;  %s74_s3 = inlined_call_operand.vmem [shape: f32[8,128], index: 3, kind: output, shape index: {}]  }
   0x1   :  { %v16_v0 = vld [vmem:[%s71_s0] sm:$0xff]  ;;  %v19_v1 = vstv %s72_s1  ;;  %v21_v2 = vstv %s73_s2 }
   0x2   :  { %v20_v3 = vmul.f32 %v19_v1, %v16_v0 }
   0x4   :  { %v22_v4 = vadd.f32 %v21_v2, %v20_v3 }
   0x6   :  { %v34_v5 = vmul.f32 -1.442695, %v22_v4 }
   0x8   :  { %35 = vpow2.f32 %v34_v5 }
  0x12   :  { %v36_v6 = vpop.eup %35 }
  0x13   :  { %v26_v7 = vadd.f32 1.0, %v36_v6 }
  0x15   :  { %37 = vrcp.f32 %v26_v7 }
  0x1f   :  { %v38_v8 = vpop.eup %37 }
  0x20   :  { %29 = vst [vmem:[%s74_s3] sm:$0xff] %v38_v8 }

</bundles_post_ra>
